<compile_context>
chip_gen: v5e
topology: v5e:2x2
jax: 0.10.0
libtpu: 0.0.40
codegen_flags: <defaults>
</compile_context>

<pallas_src>
import functools
import math

import numpy as np
import jax
import jax.numpy as jnp
from jax.experimental import pallas as pl
from jax.experimental.pallas import tpu as pltpu


def _round_up(a: int, b: int) -> int:
    return ((a + b - 1) // b) * b


def _cdiv(a: int, b: int) -> int:
    return -(-a // b)


def _tpu_generation():
    """Best-effort TPU generation sniff; conservative defaults if unknown."""
    try:
        kind = jax.devices()[0].device_kind.lower()
    except Exception:
        kind = ""
    is_v7 = "v7" in kind
    is_v5e = ("v5 lite" in kind) or ("v5e" in kind) or ("v5litepod" in kind)
    has_256_mxu = is_v7 or ("v6" in kind)
    if is_v7:
        vmem_limit = 48 << 20            # v7x: 64 MiB physical VMEM, leave headroom
    elif any(g in kind for g in ("v4", "v5", "v6")):
        vmem_limit = 96 << 20            # 128 MiB physical VMEM
    else:
        vmem_limit = None                # unknown chip: keep compiler default
    return dict(is_v7=is_v7, is_v5e=is_v5e, has_256_mxu=has_256_mxu,
                vmem_limit=vmem_limit)


def adaptor_kernel(x_ref, wp_ref, bp_ref, wf_ref, bf_ref, g_ref, b_ref, o_ref,
                   *, d_real: int, approximate_gelu: bool):
    x = x_ref[...]                                    # already in the MXU compute dtype

    # projection = x @ Wp + bp   (f32 accumulation on the MXU)
    projected = jnp.dot(x, wp_ref[...], preferred_element_type=jnp.float32)
    projected = projected + bp_ref[...]               # f32, broadcast [1, D]

    # GELU: exact erf matches PyTorch nn.GELU() default; tanh-approx optional (EUP slot).
    if approximate_gelu:
        h = jax.nn.gelu(projected, approximate=True)
    else:
        h = 0.5 * projected * (1.0 + jax.lax.erf(projected * (1.0 / math.sqrt(2.0))))

    # fc = gelu(projected) @ Wf + bf   (f32 accumulation)
    y = jnp.dot(h.astype(x.dtype), wf_ref[...], preferred_element_type=jnp.float32)

    # TODO(synk): dropout(p=0.1) is identity in eval/inference mode; training-mode
    # stochastic masking (pltpu.prng_seed/prng_random_bits) is not implemented here.
    y = y + bf_ref[...] + projected                   # bias + residual

    # LayerNorm over the *real* feature dim (eps=1e-5).  Padded columns of y are
    # exactly zero, so mean = sum(y)/D_real is exact.  Variance uses the safe
    # two-pass form; padded lanes are masked so they don't contribute (y - mean).
    inv_d = 1.0 / float(d_real)
    mean = jnp.sum(y, axis=-1, keepdims=True) * inv_d
    if y.shape[-1] != d_real:
        col = jax.lax.broadcasted_iota(jnp.int32, y.shape, dimension=1)
        centered = jnp.where(col < d_real, y - mean, 0.0)
    else:
        centered = y - mean
    var = jnp.sum(centered * centered, axis=-1, keepdims=True) * inv_d
    y_norm = centered * jax.lax.rsqrt(var + 1e-5)
    o_ref[...] = (y_norm * g_ref[...] + b_ref[...]).astype(o_ref.dtype)


def adaptor_forward(x, params, *, tile_m=None, compute_dtype=jnp.bfloat16,
                    out_dtype=None, approximate_gelu=False):
    """x: [B, S, D_in]. Returns [B, S, D_proj] in `out_dtype` (default: x.dtype)."""
    B, S, D_in = x.shape
    wp, bp, wf, bf, gamma, beta = (
        params["wp"], params["bp"], params["wf"], params["bf"],
        params["ln_gamma"], params["ln_beta"],
    )
    D_proj = wp.shape[1]
    out_dtype = x.dtype if out_dtype is None else out_dtype
    compute_dtype = np.dtype(compute_dtype)
    gen = _tpu_generation()

    # ---- lane padding: 256 keeps v6e/v7x's 2x256x256 bf16 MXU passes full;
    #      128 is optimal for f32 or v5e's 128-wide MXU. ----------------------
    lane_pad = 256 if (compute_dtype == np.dtype(jnp.bfloat16)
                       and gen["has_256_mxu"]) else 128
    D_in_p = _round_up(D_in, lane_pad)
    D_pr_p = _round_up(D_proj, lane_pad)

    def pad2d(a, rows, cols):
        return jnp.pad(a, ((0, rows - a.shape[0]), (0, cols - a.shape[1])))

    # ---- row tiling: minimize padded rows; on v7x keep the grid even so both
    #      TensorCores get work under dimension_semantics=("parallel",). -------
    M = B * S
    if tile_m is None:
        if gen["is_v7"]:
            tile_cap = 256 if D_pr_p >= 2048 else 512   # intermediates vs 64 MiB VMEM
        else:
            tile_cap = 1024
    else:
        tile_cap = tile_m
    n_tiles = max(1, _cdiv(M, tile_cap))
    if gen["is_v7"]:
        n_tiles = max(2, n_tiles)
        n_tiles += n_tiles % 2
    tile_m_eff = _round_up(_cdiv(M, n_tiles), 8)
    M_p = n_tiles * tile_m_eff

    # x streamed in the MXU compute dtype (bf16 halves x DMA bytes + buffer VMEM).
    x2d = pad2d(x.reshape(M, D_in), M_p, D_in_p).astype(compute_dtype)

    # Resident weights: padded, pre-transposed [in, out], stored in compute dtype.
    wp_p = pad2d(wp, D_in_p, D_pr_p).astype(compute_dtype)
    wf_p = pad2d(wf, D_pr_p, D_pr_p).astype(compute_dtype)
    # Biases / LN params stay f32 (epilogue precision); zero-padded.
    bp_p = pad2d(bp, 1, D_pr_p)
    bf_p = pad2d(bf, 1, D_pr_p)
    g_p = pad2d(gamma, 1, D_pr_p)
    b_p = pad2d(beta, 1, D_pr_p)

    # TODO(synk): for very large D (resident bf16 weights > ~40% of VMEM, e.g.
    # D >= 4096 on v7x's 64 MiB), stream K-slabs of Wp/Wf from memory_space=pl.ANY
    # with pltpu.emit_pipeline instead of keeping both matrices VMEM-resident.

    kernel = functools.partial(adaptor_kernel, d_real=D_proj,
                               approximate_gelu=approximate_gelu)

    itemsize_c = compute_dtype.itemsize
    cost = pl.CostEstimate(
        flops=2 * M * (D_in * D_proj + D_proj * D_proj),
        transcendentals=M * D_proj,
        bytes_accessed=(M * D_in * itemsize_c                           # x read
                        + M * D_proj * np.dtype(out_dtype).itemsize     # out write
                        + (D_in * D_proj + D_proj * D_proj) * itemsize_c  # weights
                        + 4 * D_proj * 4),                              # bp, bf, gamma, beta
    )

    cp_kwargs = dict(dimension_semantics=("parallel",))
    if gen["vmem_limit"] is not None:
        cp_kwargs["vmem_limit_bytes"] = gen["vmem_limit"]
    compiler_params = pltpu.CompilerParams(**cp_kwargs)

    x_spec = pl.BlockSpec((tile_m_eff, D_in_p), lambda i: (i, 0))
    out_spec = pl.BlockSpec((tile_m_eff, D_pr_p), lambda i: (i, 0))

    def build(single_buffer_resident: bool):
        if single_buffer_resident:
            # Constant-index operands only need ONE VMEM buffer (Pallas would
            # otherwise double-buffer them): halves resident-weight footprint.
            resident = lambda shape: pl.BlockSpec(
                shape, lambda i: (0, 0), pipeline_mode=pl.Buffered(1))
        else:
            resident = lambda shape: pl.BlockSpec(shape, lambda i: (0, 0))
        return pl.pallas_call(
            kernel,
            out_shape=jax.ShapeDtypeStruct((M_p, D_pr_p), out_dtype),
            grid=(n_tiles,),
            in_specs=[
                x_spec,                       # x  [TILE_M, D_in_p]  (pipelined)
                resident((D_in_p, D_pr_p)),   # Wp (transposed, resident)
                resident((1, D_pr_p)),        # bp
                resident((D_pr_p, D_pr_p)),   # Wf (transposed, resident)
                resident((1, D_pr_p)),        # bf
                resident((1, D_pr_p)),        # ln gamma
                resident((1, D_pr_p)),        # ln beta
            ],
            out_specs=out_spec,
            compiler_params=compiler_params,
            cost_estimate=cost,
        )

    args = (x2d, wp_p, bp_p, wf_p, bf_p, g_p, b_p)
    try:
        out2d = build(True)(*args)
    except Exception:
        # pipeline_mode=pl.Buffered(1) unavailable on this jax version: fall back
        # to default double-buffered resident operands (correctness unchanged).
        out2d = build(False)(*args)

    return out2d[:M, :D_proj].reshape(B, S, D_proj)


def init_params(key, input_dim, projection_dim):
    """Deterministic init mimicking nn.Linear default (uniform +-1/sqrt(fan_in))."""
    k1, k2, k3, k4 = jax.random.split(key, 4)
    lim_p = 1.0 / math.sqrt(input_dim)
    lim_f = 1.0 / math.sqrt(projection_dim)
    # stored pre-transposed: [in, out]
    wp = jax.random.uniform(k1, (input_dim, projection_dim), jnp.float32, -lim_p, lim_p)
    bp = jax.random.uniform(k2, (1, projection_dim), jnp.float32, -lim_p, lim_p)
    wf = jax.random.uniform(k3, (projection_dim, projection_dim), jnp.float32, -lim_f, lim_f)
    bf = jax.random.uniform(k4, (1, projection_dim), jnp.float32, -lim_f, lim_f)
    ln_gamma = jnp.ones((1, projection_dim), jnp.float32)
    ln_beta = jnp.zeros((1, projection_dim), jnp.float32)
    return dict(wp=wp, bp=bp, wf=wf, bf=bf, ln_gamma=ln_gamma, ln_beta=ln_beta)


def reference_forward(x, params):
    """Pure-JAX (f32) reference matching the PyTorch module in eval mode."""
    projected = x @ params["wp"] + params["bp"][0]
    h = 0.5 * projected * (1.0 + jax.lax.erf(projected / math.sqrt(2.0)))
    y = h @ params["wf"] + params["bf"][0]
    y = y + projected
    mean = jnp.mean(y, axis=-1, keepdims=True)
    var = jnp.mean((y - mean) ** 2, axis=-1, keepdims=True)
    yn = (y - mean) * jax.lax.rsqrt(var + 1e-5)
    return yn * params["ln_gamma"][0] + params["ln_beta"][0]


if __name__ == "__main__":
    key = jax.random.PRNGKey(0)

    def check(B, S, d_in, d_proj, compute_dtype, tol):
        kx, kp = jax.random.split(jax.random.fold_in(key, d_in * 1000 + d_proj))
        x = jax.random.normal(kx, (B, S, d_in), jnp.float32)
        params = init_params(kp, d_in, d_proj)
        ref = reference_forward(x, params)
        out = jax.block_until_ready(
            adaptor_forward(x, params, compute_dtype=compute_dtype))
        assert out.shape == (B, S, d_proj)
        assert jnp.allclose(out, ref, atol=tol, rtol=tol), (
            f"mismatch (compute_dtype={compute_dtype}, D_in={d_in}, D_proj={d_proj})")

    # Small shapes consistent with the module: [B, S, D_in] -> [B, S, D_proj].
    check(2, 8, 32, 32, jnp.float32, 1e-4)    # f32 MXU path, tight tolerance
    check(2, 8, 32, 32, jnp.bfloat16, 3e-2)   # bf16 MXU path (f32 accumulation)
    # Non-multiple-of-8 rows and rectangular dims exercise row/lane padding paths.
    check(3, 5, 48, 40, jnp.float32, 1e-4)
    check(3, 5, 48, 40, jnp.bfloat16, 3e-2)

    print("KERNEL_OK")
</pallas_src>

<mosaic_0001>
module attributes {stable_mosaic.version = 11 : i64} {
  func.func @adaptor_kernel(%arg0: i32, %arg1: memref<16x128xf32, #tpu.memory_space<vmem>>, %arg2: memref<128x128xf32, #tpu.memory_space<vmem>>, %arg3: memref<1x128xf32, #tpu.memory_space<vmem>>, %arg4: memref<128x128xf32, #tpu.memory_space<vmem>>, %arg5: memref<1x128xf32, #tpu.memory_space<vmem>>, %arg6: memref<1x128xf32, #tpu.memory_space<vmem>>, %arg7: memref<1x128xf32, #tpu.memory_space<vmem>>, %arg8: memref<16x128xf32, #tpu.memory_space<vmem>>) attributes {dimension_semantics = [#tpu.dimension_semantics<parallel>], iteration_bounds = array<i64: 1>, scalar_prefetch = 0 : i64, scratch_operands = 0 : i64, tpu.core_type = #tpu.core_type<tc>, window_params = [{transform_indices = @transform_0, window_bounds = array<i64: 16, 128>}, {pipeline_mode = #tpu.pipeline_mode<synchronous>, transform_indices = @transform_1, window_bounds = array<i64: 128, 128>}, {pipeline_mode = #tpu.pipeline_mode<synchronous>, transform_indices = @transform_2, window_bounds = array<i64: 1, 128>}, {pipeline_mode = #tpu.pipeline_mode<synchronous>, transform_indices = @transform_3, window_bounds = array<i64: 128, 128>}, {pipeline_mode = #tpu.pipeline_mode<synchronous>, transform_indices = @transform_4, window_bounds = array<i64: 1, 128>}, {pipeline_mode = #tpu.pipeline_mode<synchronous>, transform_indices = @transform_5, window_bounds = array<i64: 1, 128>}, {pipeline_mode = #tpu.pipeline_mode<synchronous>, transform_indices = @transform_6, window_bounds = array<i64: 1, 128>}, {transform_indices = @transform_7, window_bounds = array<i64: 16, 128>}]} {
    %c0 = arith.constant 0 : index
    %c0_0 = arith.constant 0 : index
    %0 = vector.load %arg1[%c0, %c0_0] : memref<16x128xf32, #tpu.memory_space<vmem>>, vector<16x128xf32>
    %c0_1 = arith.constant 0 : index
    %c0_2 = arith.constant 0 : index
    %1 = vector.load %arg2[%c0_1, %c0_2] : memref<128x128xf32, #tpu.memory_space<vmem>>, vector<128x128xf32>
    %cst = arith.constant dense<0.000000e+00> : vector<16x128xf32>
    %2 = tpu.matmul %0, %1, %cst {dimension_numbers = #tpu.dot_dimension_numbers<[1], [0], [0], [1], [0, 0, 1, 1], [], []>} : vector<16x128xf32>, vector<128x128xf32>, vector<16x128xf32> -> vector<16x128xf32>
    %c0_3 = arith.constant 0 : index
    %c0_4 = arith.constant 0 : index
    %3 = vector.load %arg3[%c0_3, %c0_4] : memref<1x128xf32, #tpu.memory_space<vmem>>, vector<1x128xf32>
    %4 = vector.broadcast %3 : vector<1x128xf32> to vector<16x128xf32>
    %5 = arith.addf %2, %4 : vector<16x128xf32>
    %cst_5 = arith.constant 5.000000e-01 : f32
    %6 = vector.broadcast %cst_5 : f32 to vector<16x128xf32>
    %7 = arith.mulf %6, %5 : vector<16x128xf32>
    %cst_6 = arith.constant 0.707106769 : f32
    %8 = vector.broadcast %cst_6 : f32 to vector<16x128xf32>
    %9 = arith.mulf %5, %8 : vector<16x128xf32>
    %10 = math.erf %9 : vector<16x128xf32>
    %cst_7 = arith.constant 1.000000e+00 : f32
    %11 = vector.broadcast %cst_7 : f32 to vector<16x128xf32>
    %12 = arith.addf %11, %10 : vector<16x128xf32>
    %13 = arith.mulf %7, %12 : vector<16x128xf32>
    %c0_8 = arith.constant 0 : index
    %c0_9 = arith.constant 0 : index
    %14 = vector.load %arg4[%c0_8, %c0_9] : memref<128x128xf32, #tpu.memory_space<vmem>>, vector<128x128xf32>
    %cst_10 = arith.constant dense<0.000000e+00> : vector<16x128xf32>
    %15 = tpu.matmul %13, %14, %cst_10 {dimension_numbers = #tpu.dot_dimension_numbers<[1], [0], [0], [1], [0, 0, 1, 1], [], []>} : vector<16x128xf32>, vector<128x128xf32>, vector<16x128xf32> -> vector<16x128xf32>
    %c0_11 = arith.constant 0 : index
    %c0_12 = arith.constant 0 : index
    %16 = vector.load %arg5[%c0_11, %c0_12] : memref<1x128xf32, #tpu.memory_space<vmem>>, vector<1x128xf32>
    %17 = vector.broadcast %16 : vector<1x128xf32> to vector<16x128xf32>
    %18 = arith.addf %15, %17 : vector<16x128xf32>
    %19 = arith.addf %18, %5 : vector<16x128xf32>
    %cst_13 = arith.constant dense<0.000000e+00> : vector<16xf32>
    %20 = vector.multi_reduction <add>, %19, %cst_13 [1] : vector<16x128xf32> to vector<16xf32>
    %21 = vector.shape_cast %20 : vector<16xf32> to vector<16x1xf32>
    %cst_14 = arith.constant 3.125000e-02 : f32
    %22 = vector.broadcast %cst_14 : f32 to vector<16x1xf32>
    %23 = arith.mulf %21, %22 : vector<16x1xf32>
    %24 = tpu.iota {dimensions = array<i32: 1>} : vector<16x128xi32>
    %c32_i32 = arith.constant 32 : i32
    %25 = vector.broadcast %c32_i32 : i32 to vector<16x128xi32>
    %26 = arith.cmpi slt, %24, %25 : vector<16x128xi32>
    %27 = vector.broadcast %23 : vector<16x1xf32> to vector<16x128xf32>
    %28 = arith.subf %19, %27 : vector<16x128xf32>
    %cst_15 = arith.constant 0.000000e+00 : f32
    %29 = vector.broadcast %cst_15 : f32 to vector<16x128xf32>
    %30 = arith.select %26, %28, %29 : vector<16x128xi1>, vector<16x128xf32>
    %31 = arith.mulf %30, %30 : vector<16x128xf32>
    %cst_16 = arith.constant dense<0.000000e+00> : vector<16xf32>
    %32 = vector.multi_reduction <add>, %31, %cst_16 [1] : vector<16x128xf32> to vector<16xf32>
    %33 = vector.shape_cast %32 : vector<16xf32> to vector<16x1xf32>
    %cst_17 = arith.constant 3.125000e-02 : f32
    %34 = vector.broadcast %cst_17 : f32 to vector<16x1xf32>
    %35 = arith.mulf %33, %34 : vector<16x1xf32>
    %cst_18 = arith.constant 9.99999974E-6 : f32
    %36 = vector.broadcast %cst_18 : f32 to vector<16x1xf32>
    %37 = arith.addf %35, %36 : vector<16x1xf32>
    %38 = math.rsqrt %37 : vector<16x1xf32>
    %39 = vector.broadcast %38 : vector<16x1xf32> to vector<16x128xf32>
    %40 = arith.mulf %30, %39 : vector<16x128xf32>
    %c0_19 = arith.constant 0 : index
    %c0_20 = arith.constant 0 : index
    %41 = vector.load %arg6[%c0_19, %c0_20] : memref<1x128xf32, #tpu.memory_space<vmem>>, vector<1x128xf32>
    %42 = vector.broadcast %41 : vector<1x128xf32> to vector<16x128xf32>
    %43 = arith.mulf %40, %42 : vector<16x128xf32>
    %c0_21 = arith.constant 0 : index
    %c0_22 = arith.constant 0 : index
    %44 = vector.load %arg7[%c0_21, %c0_22] : memref<1x128xf32, #tpu.memory_space<vmem>>, vector<1x128xf32>
    %45 = vector.broadcast %44 : vector<1x128xf32> to vector<16x128xf32>
    %46 = arith.addf %43, %45 : vector<16x128xf32>
    %c0_23 = arith.constant 0 : index
    %c0_24 = arith.constant 0 : index
    %47 = vector.load %arg8[%c0_23, %c0_24] : memref<16x128xf32, #tpu.memory_space<vmem>>, vector<16x128xf32>
    tpu.vector_store %arg8[%c0_23, %c0_24], %46 {strides = array<i32>} : memref<16x128xf32, #tpu.memory_space<vmem>>, vector<16x128xf32>,
    return
  }
  func.func @transform_0(%arg0: i32) -> (i32, i32) {
    %c0_i32 = arith.constant 0 : i32
    %c0_i32_0 = arith.constant 0 : i32
    return %arg0, %c0_i32 : i32, i32
  }
  func.func @transform_1(%arg0: i32) -> (i32, i32) {
    %c0_i32 = arith.constant 0 : i32
    %c0_i32_0 = arith.constant 0 : i32
    %c0_i32_1 = arith.constant 0 : i32
    return %c0_i32, %c0_i32_0 : i32, i32
  }
  func.func @transform_2(%arg0: i32) -> (i32, i32) {
    %c0_i32 = arith.constant 0 : i32
    %c0_i32_0 = arith.constant 0 : i32
    %c0_i32_1 = arith.constant 0 : i32
    return %c0_i32, %c0_i32_0 : i32, i32
  }
  func.func @transform_3(%arg0: i32) -> (i32, i32) {
    %c0_i32 = arith.constant 0 : i32
    %c0_i32_0 = arith.constant 0 : i32
    %c0_i32_1 = arith.constant 0 : i32
    return %c0_i32, %c0_i32_0 : i32, i32
  }
  func.func @transform_4(%arg0: i32) -> (i32, i32) {
    %c0_i32 = arith.constant 0 : i32
    %c0_i32_0 = arith.constant 0 : i32
    %c0_i32_1 = arith.constant 0 : i32
    return %c0_i32, %c0_i32_0 : i32, i32
  }
  func.func @transform_5(%arg0: i32) -> (i32, i32) {
    %c0_i32 = arith.constant 0 : i32
    %c0_i32_0 = arith.constant 0 : i32
    %c0_i32_1 = arith.constant 0 : i32
    return %c0_i32, %c0_i32_0 : i32, i32
  }
  func.func @transform_6(%arg0: i32) -> (i32, i32) {
    %c0_i32 = arith.constant 0 : i32
    %c0_i32_0 = arith.constant 0 : i32
    %c0_i32_1 = arith.constant 0 : i32
    return %c0_i32, %c0_i32_0 : i32, i32
  }
  func.func @transform_7(%arg0: i32) -> (i32, i32) {
    %c0_i32 = arith.constant 0 : i32
    %c0_i32_0 = arith.constant 0 : i32
    return %arg0, %c0_i32 : i32, i32
  }
}

module attributes {stable_mosaic.version = 11 : i64} {
  func.func @adaptor_kernel(%arg0: i32, %arg1: memref<16x128xf32, #tpu.memory_space<vmem>>, %arg2: memref<128x128xf32, #tpu.memory_space<vmem>>, %arg3: memref<1x128xf32, #tpu.memory_space<vmem>>, %arg4: memref<128x128xf32, #tpu.memory_space<vmem>>, %arg5: memref<1x128xf32, #tpu.memory_space<vmem>>, %arg6: memref<1x128xf32, #tpu.memory_space<vmem>>, %arg7: memref<1x128xf32, #tpu.memory_space<vmem>>, %arg8: memref<16x128xf32, #tpu.memory_space<vmem>>) attributes {dimension_semantics = [#tpu.dimension_semantics<parallel>], iteration_bounds = array<i64: 1>, scalar_prefetch = 0 : i64, scratch_operands = 0 : i64, tpu.core_type = #tpu.core_type<tc>, window_params = [{transform_indices = @transform_0, window_bounds = array<i64: 16, 128>}, {pipeline_mode = #tpu.pipeline_mode<synchronous>, transform_indices = @transform_1, window_bounds = array<i64: 128, 128>}, {pipeline_mode = #tpu.pipeline_mode<synchronous>, transform_indices = @transform_2, window_bounds = array<i64: 1, 128>}, {pipeline_mode = #tpu.pipeline_mode<synchronous>, transform_indices = @transform_3, window_bounds = array<i64: 128, 128>}, {pipeline_mode = #tpu.pipeline_mode<synchronous>, transform_indices = @transform_4, window_bounds = array<i64: 1, 128>}, {pipeline_mode = #tpu.pipeline_mode<synchronous>, transform_indices = @transform_5, window_bounds = array<i64: 1, 128>}, {pipeline_mode = #tpu.pipeline_mode<synchronous>, transform_indices = @transform_6, window_bounds = array<i64: 1, 128>}, {transform_indices = @transform_7, window_bounds = array<i64: 16, 128>}]} {
    %c0 = arith.constant 0 : index
    %c0_0 = arith.constant 0 : index
    %0 = vector.load %arg1[%c0, %c0_0] : memref<16x128xf32, #tpu.memory_space<vmem>>, vector<16x128xf32>
    %c0_1 = arith.constant 0 : index
    %c0_2 = arith.constant 0 : index
    %1 = vector.load %arg2[%c0_1, %c0_2] : memref<128x128xf32, #tpu.memory_space<vmem>>, vector<128x128xf32>
    %cst = arith.constant dense<0.000000e+00> : vector<16x128xf32>
    %2 = tpu.matmul %0, %1, %cst {dimension_numbers = #tpu.dot_dimension_numbers<[1], [0], [0], [1], [0, 0, 1, 1], [], []>} : vector<16x128xf32>, vector<128x128xf32>, vector<16x128xf32> -> vector<16x128xf32>
    %c0_3 = arith.constant 0 : index
    %c0_4 = arith.constant 0 : index
    %3 = vector.load %arg3[%c0_3, %c0_4] : memref<1x128xf32, #tpu.memory_space<vmem>>, vector<1x128xf32>
    %4 = vector.broadcast %3 : vector<1x128xf32> to vector<16x128xf32>
    %5 = arith.addf %2, %4 : vector<16x128xf32>
    %cst_5 = arith.constant 5.000000e-01 : f32
    %6 = vector.broadcast %cst_5 : f32 to vector<16x128xf32>
    %7 = arith.mulf %6, %5 : vector<16x128xf32>
    %cst_6 = arith.constant 0.707106769 : f32
    %8 = vector.broadcast %cst_6 : f32 to vector<16x128xf32>
    %9 = arith.mulf %5, %8 : vector<16x128xf32>
    %10 = math.erf %9 : vector<16x128xf32>
    %cst_7 = arith.constant 1.000000e+00 : f32
    %11 = vector.broadcast %cst_7 : f32 to vector<16x128xf32>
    %12 = arith.addf %11, %10 : vector<16x128xf32>
    %13 = arith.mulf %7, %12 : vector<16x128xf32>
    %c0_8 = arith.constant 0 : index
    %c0_9 = arith.constant 0 : index
    %14 = vector.load %arg4[%c0_8, %c0_9] : memref<128x128xf32, #tpu.memory_space<vmem>>, vector<128x128xf32>
    %cst_10 = arith.constant dense<0.000000e+00> : vector<16x128xf32>
    %15 = tpu.matmul %13, %14, %cst_10 {dimension_numbers = #tpu.dot_dimension_numbers<[1], [0], [0], [1], [0, 0, 1, 1], [], []>} : vector<16x128xf32>, vector<128x128xf32>, vector<16x128xf32> -> vector<16x128xf32>
    %c0_11 = arith.constant 0 : index
    %c0_12 = arith.constant 0 : index
    %16 = vector.load %arg5[%c0_11, %c0_12] : memref<1x128xf32, #tpu.memory_space<vmem>>, vector<1x128xf32>
    %17 = vector.broadcast %16 : vector<1x128xf32> to vector<16x128xf32>
    %18 = arith.addf %15, %17 : vector<16x128xf32>
    %19 = arith.addf %18, %5 : vector<16x128xf32>
    %cst_13 = arith.constant dense<0.000000e+00> : vector<16xf32>
    %20 = vector.multi_reduction <add>, %19, %cst_13 [1] : vector<16x128xf32> to vector<16xf32>
    %21 = vector.shape_cast %20 : vector<16xf32> to vector<16x1xf32>
    %cst_14 = arith.constant 3.125000e-02 : f32
    %22 = vector.broadcast %cst_14 : f32 to vector<16x1xf32>
    %23 = arith.mulf %21, %22 : vector<16x1xf32>
    %24 = tpu.iota {dimensions = array<i32: 1>} : vector<16x128xi32>
    %c32_i32 = arith.constant 32 : i32
    %25 = vector.broadcast %c32_i32 : i32 to vector<16x128xi32>
    %26 = arith.cmpi slt, %24, %25 : vector<16x128xi32>
    %27 = vector.broadcast %23 : vector<16x1xf32> to vector<16x128xf32>
    %28 = arith.subf %19, %27 : vector<16x128xf32>
    %cst_15 = arith.constant 0.000000e+00 : f32
    %29 = vector.broadcast %cst_15 : f32 to vector<16x128xf32>
    %30 = arith.select %26, %28, %29 : vector<16x128xi1>, vector<16x128xf32>
    %31 = arith.mulf %30, %30 : vector<16x128xf32>
    %cst_16 = arith.constant dense<0.000000e+00> : vector<16xf32>
    %32 = vector.multi_reduction <add>, %31, %cst_16 [1] : vector<16x128xf32> to vector<16xf32>
    %33 = vector.shape_cast %32 : vector<16xf32> to vector<16x1xf32>
    %cst_17 = arith.constant 3.125000e-02 : f32
    %34 = vector.broadcast %cst_17 : f32 to vector<16x1xf32>
    %35 = arith.mulf %33, %34 : vector<16x1xf32>
    %cst_18 = arith.constant 9.99999974E-6 : f32
    %36 = vector.broadcast %cst_18 : f32 to vector<16x1xf32>
    %37 = arith.addf %35, %36 : vector<16x1xf32>
    %38 = math.rsqrt %37 : vector<16x1xf32>
    %39 = vector.broadcast %38 : vector<16x1xf32> to vector<16x128xf32>
    %40 = arith.mulf %30, %39 : vector<16x128xf32>
    %c0_19 = arith.constant 0 : index
    %c0_20 = arith.constant 0 : index
    %41 = vector.load %arg6[%c0_19, %c0_20] : memref<1x128xf32, #tpu.memory_space<vmem>>, vector<1x128xf32>
    %42 = vector.broadcast %41 : vector<1x128xf32> to vector<16x128xf32>
    %43 = arith.mulf %40, %42 : vector<16x128xf32>
    %c0_21 = arith.constant 0 : index
    %c0_22 = arith.constant 0 : index
    %44 = vector.load %arg7[%c0_21, %c0_22] : memref<1x128xf32, #tpu.memory_space<vmem>>, vector<1x128xf32>
    %45 = vector.broadcast %44 : vector<1x128xf32> to vector<16x128xf32>
    %46 = arith.addf %43, %45 : vector<16x128xf32>
    %c0_23 = arith.constant 0 : index
    %c0_24 = arith.constant 0 : index
    %47 = vector.load %arg8[%c0_23, %c0_24] : memref<16x128xf32, #tpu.memory_space<vmem>>, vector<16x128xf32>
    tpu.vector_store %arg8[%c0_23, %c0_24], %46 {strides = array<i32>} : memref<16x128xf32, #tpu.memory_space<vmem>>, vector<16x128xf32>,
    return
  }
  func.func @transform_0(%arg0: i32) -> (i32, i32) {
    %c0_i32 = arith.constant 0 : i32
    %c0_i32_0 = arith.constant 0 : i32
    return %arg0, %c0_i32 : i32, i32
  }
  func.func @transform_1(%arg0: i32) -> (i32, i32) {
    %c0_i32 = arith.constant 0 : i32
    %c0_i32_0 = arith.constant 0 : i32
    %c0_i32_1 = arith.constant 0 : i32
    return %c0_i32, %c0_i32_0 : i32, i32
  }
  func.func @transform_2(%arg0: i32) -> (i32, i32) {
    %c0_i32 = arith.constant 0 : i32
    %c0_i32_0 = arith.constant 0 : i32
    %c0_i32_1 = arith.constant 0 : i32
    return %c0_i32, %c0_i32_0 : i32, i32
  }
  func.func @transform_3(%arg0: i32) -> (i32, i32) {
    %c0_i32 = arith.constant 0 : i32
    %c0_i32_0 = arith.constant 0 : i32
    %c0_i32_1 = arith.constant 0 : i32
    return %c0_i32, %c0_i32_0 : i32, i32
  }
  func.func @transform_4(%arg0: i32) -> (i32, i32) {
    %c0_i32 = arith.constant 0 : i32
    %c0_i32_0 = arith.constant 0 : i32
    %c0_i32_1 = arith.constant 0 : i32
    return %c0_i32, %c0_i32_0 : i32, i32
  }
  func.func @transform_5(%arg0: i32) -> (i32, i32) {
    %c0_i32 = arith.constant 0 : i32
    %c0_i32_0 = arith.constant 0 : i32
    %c0_i32_1 = arith.constant 0 : i32
    return %c0_i32, %c0_i32_0 : i32, i32
  }
  func.func @transform_6(%arg0: i32) -> (i32, i32) {
    %c0_i32 = arith.constant 0 : i32
    %c0_i32_0 = arith.constant 0 : i32
    %c0_i32_1 = arith.constant 0 : i32
    return %c0_i32, %c0_i32_0 : i32, i32
  }
  func.func @transform_7(%arg0: i32) -> (i32, i32) {
    %c0_i32 = arith.constant 0 : i32
    %c0_i32_0 = arith.constant 0 : i32
    return %arg0, %c0_i32 : i32, i32
  }
}

</mosaic_0001>

<bundles_post_ra>
// kernel: tpu_custom_call.1
= control target key start
LH: loop header
LB: loop body
LE: loop exit
PB: predicated region body
PF: predicated region fallthrough
CT: control target
= control target key end

     0   :  { %12 = vsyncpa [#allocation3], 0  ;;  %s587_s0 = inlined_call_operand.hbm [shape: f32[16,128], index: 0, kind: input, shape index: {}]   ;;  %s588_s1 = inlined_call_operand.hbm [shape: f32[128,128], index: 1, kind: input, shape index: {}]   ;;  %s589_s2 = inlined_call_operand.vmem [shape: f32[1,128], index: 2, kind: input, shape index: {}]   ;;  %s590_s3 = inlined_call_operand.hbm [shape: f32[128,128], index: 3, kind: input, shape index: {}]   ;;  %s591_s4 = inlined_call_operand.vmem [shape: f32[1,128], index: 4, kind: input, shape index: {}]   ;;  %s592_s5 = inlined_call_operand.vmem [shape: f32[1,128], index: 5, kind: input, shape index: {}]   ;;  %s593_s6 = inlined_call_operand.vmem [shape: f32[1,128], index: 6, kind: input, shape index: {}]   ;;  %s594_s7 = inlined_call_operand.hbm [shape: f32[16,128], index: 7, kind: output, shape index: {}]  }
   0x1   :  { %13 = vsyncpa [#allocation6], 0 }
   0x2   :  { %14 = vsyncpa [#allocation4], 0  ;;  %s32_s26 = sshll.u32 %s588_s1, 4  ;;  %s485_s27 = smov [#allocation5]   ;;  %s33_s26 = int_to_ptr.hbm [resolvable:$true] %s32_s26 }
   0x3   :  { %s34_s28 = sshll.u32 %s485_s27, 4  ;;  %s19_s8 = sshll.u32 %s587_s0, 4  ;;  %s35_s28 = int_to_ptr.vmem [resolvable:$true] %s34_s28  ;;  %s20_s8 = int_to_ptr.hbm [resolvable:$true] %s19_s8 }
   0x4   :  { %s486_s9 = smov 128   ;;  %s487_s10 = smov 8  }
   0x5   :  { %40 = dma.hbm_to_vmem [thread:$0]  %s33_s26, 2048, %s35_s28, [#allocation6], %s486_s9, %s486_s9, %s487_s10  }
   0x6   :  { %s488_s11 = smov [#allocation2]   ;;  %s47_s1 = sshll.u32 %s590_s3, 4  ;;  %s48_s1 = int_to_ptr.hbm [resolvable:$true] %s47_s1 }
   0x7   :  { %s21_s12 = sshll.u32 %s488_s11, 4  ;;  %s489_s0 = smov [#allocation7]   ;;  %s22_s12 = int_to_ptr.vmem [resolvable:$true] %s21_s12 }
   0x8   :  { %27 = dma.hbm_to_vmem [thread:$0]  %s20_s8, 256, %s22_s12, [#allocation3], %s486_s9, %s486_s9, %s487_s10  }
   0x9   :  { %s49_s15 = sshll.u32 %s489_s0, 4  ;;  %s50_s15 = int_to_ptr.vmem [resolvable:$true] %s49_s15 }
   0xa   :  { %55 = dma.hbm_to_vmem [thread:$0]  %s48_s1, 2048, %s50_s15, [#allocation6], %s486_s9, %s486_s9, %s487_s10  }
   0xb   :  { %479 = dma.done.wait [#allocation3], 256  }
   0xc   :  { %480 = vsyncadd [#allocation3], 4294967040 }
   0xd   :  { %481 = dma.done.wait [#allocation6], 4096  }
   0xe   :  { %482 = vsyncadd [#allocation6], 4294963200  ;;  %v91_v0 = vld [vmem:[#allocation5 + $0x78] sm:$0xff]  ;;  %v90_v1 = vld [vmem:[#allocation5 + $0x70] sm:$0xff] }
   0xf   :  { %96 = vmatpush.msra.mxu0 %v91_v0  ;;  %333 = vmatpush.msra.mxu2 %v91_v0  ;;  %v89_v2 = vld [vmem:[#allocation5 + $0x68] sm:$0xff]  ;;  %v88_v3 = vld [vmem:[#allocation5 + $0x60] sm:$0xff]  ;;  %v87_v4 = vld [vmem:[#allocation5 + $0x58] sm:$0xff] }
  0x10   :  { %v86_v5 = vld [vmem:[#allocation5 + $0x50] sm:$0xff]  ;;  %v85_v6 = vld [vmem:[#allocation5 + $0x48] sm:$0xff]  ;;  %v84_v7 = vld [vmem:[#allocation5 + $0x40] sm:$0xff] }
  0x11   :  { %97 = vmatpush.msra.mxu0 %v90_v1  ;;  %334 = vmatpush.msra.mxu2 %v90_v1  ;;  %v83_v8 = vld [vmem:[#allocation5 + $0x38] sm:$0xff]  ;;  %v82_v9 = vld [vmem:[#allocation5 + $0x30] sm:$0xff]  ;;  %v81_v10 = vld [vmem:[#allocation5 + $0x28] sm:$0xff] }
  0x12   :  { %v80_v11 = vld [vmem:[#allocation5 + $0x20] sm:$0xff]  ;;  %v79_v12 = vld [vmem:[#allocation5 + $0x18] sm:$0xff]  ;;  %v78_v13 = vld [vmem:[#allocation5 + $0x10] sm:$0xff] }
  0x13   :  { %98 = vmatpush.msra.mxu0 %v89_v2  ;;  %335 = vmatpush.msra.mxu2 %v89_v2  ;;  %v77_v14 = vld [vmem:[#allocation5 + $0x8] sm:$0xff]  ;;  %v76_v15 = vld [vmem:[#allocation5] sm:$0xff]  ;;  %v74_v16 = vld [vmem:[#allocation2] sm:$0xff] }
  0x14   :  { %v75_v17 = vld [vmem:[#allocation2 + $0x8] sm:$0xff]  ;;  %v221_v19 = vld [vmem:[#allocation7 + $0x70] sm:$0xff]  ;;  %v220_v20 = vld [vmem:[#allocation7 + $0x68] sm:$0xff] }
  0x15   :  { %99 = vmatpush.msra.mxu0 %v88_v3  ;;  %336 = vmatpush.msra.mxu2 %v88_v3  ;;  %v222_v18 = vld [vmem:[#allocation7 + $0x78] sm:$0xff]  ;;  %v219_v21 = vld [vmem:[#allocation7 + $0x60] sm:$0xff]  ;;  %v217_v23 = vld [vmem:[#allocation7 + $0x50] sm:$0xff] }
  0x16   :  { %227 = vmatpush.msra.mxu1 %v222_v18  ;;  %349 = vmatpush.msra.mxu3 %v222_v18  ;;  %v218_v22 = vld [vmem:[#allocation7 + $0x58] sm:$0xff]  ;;  %v216_v24 = vld [vmem:[#allocation7 + $0x48] sm:$0xff]  ;;  %v215_v25 = vld [vmem:[#allocation7 + $0x40] sm:$0xff] }
  0x17   :  { %100 = vmatpush.msra.mxu0 %v87_v4  ;;  %337 = vmatpush.msra.mxu2 %v87_v4  ;;  %v214_v26 = vld [vmem:[#allocation7 + $0x38] sm:$0xff]  ;;  %v371_v27 = vld [vmem:[%s589_s2] ss:$0 sm:$0xff]  ;;  %v212_v29 = vld [vmem:[#allocation7 + $0x28] sm:$0xff] }
  0x18   :  { %228 = vmatpush.msra.mxu1 %v221_v19  ;;  %350 = vmatpush.msra.mxu3 %v221_v19  ;;  %v213_v28 = vld [vmem:[#allocation7 + $0x30] sm:$0xff]  ;;  %v211_v32 = vld [vmem:[#allocation7 + $0x20] sm:$0xff]  ;;  %v210_v34 = vld [vmem:[#allocation7 + $0x18] sm:$0xff] }
  0x19   :  { %101 = vmatpush.msra.mxu0 %v86_v5  ;;  %338 = vmatpush.msra.mxu2 %v86_v5  ;;  %v209_v36 = vld [vmem:[#allocation7 + $0x10] sm:$0xff]  ;;  %v208_v40 = vld [vmem:[#allocation7 + $0x8] sm:$0xff]  ;;  %v207_v41 = vld [vmem:[#allocation7] sm:$0xff] }
  0x1a   :  { %229 = vmatpush.msra.mxu1 %v220_v20  ;;  %351 = vmatpush.msra.mxu3 %v220_v20 }
  0x1b   :  { %102 = vmatpush.msra.mxu0 %v85_v6  ;;  %339 = vmatpush.msra.mxu2 %v85_v6 }
  0x1c   :  { %230 = vmatpush.msra.mxu1 %v219_v21  ;;  %352 = vmatpush.msra.mxu3 %v219_v21 }
  0x1d   :  { %103 = vmatpush.msra.mxu0 %v84_v7  ;;  %340 = vmatpush.msra.mxu2 %v84_v7 }
  0x1e   :  { %231 = vmatpush.msra.mxu1 %v218_v22  ;;  %353 = vmatpush.msra.mxu3 %v218_v22 }
  0x1f   :  { %104 = vmatpush.msra.mxu0 %v83_v8  ;;  %341 = vmatpush.msra.mxu2 %v83_v8 }
  0x20   :  { %232 = vmatpush.msra.mxu1 %v217_v23  ;;  %354 = vmatpush.msra.mxu3 %v217_v23 }
  0x21   :  { %105 = vmatpush.msra.mxu0 %v82_v9  ;;  %342 = vmatpush.msra.mxu2 %v82_v9 }
  0x22   :  { %233 = vmatpush.msra.mxu1 %v216_v24  ;;  %355 = vmatpush.msra.mxu3 %v216_v24 }
  0x23   :  { %106 = vmatpush.msra.mxu0 %v81_v10  ;;  %343 = vmatpush.msra.mxu2 %v81_v10 }
  0x24   :  { %234 = vmatpush.msra.mxu1 %v215_v25  ;;  %356 = vmatpush.msra.mxu3 %v215_v25 }
  0x25   :  { %107 = vmatpush.msra.mxu0 %v80_v11  ;;  %344 = vmatpush.msra.mxu2 %v80_v11 }
  0x26   :  { %235 = vmatpush.msra.mxu1 %v214_v26  ;;  %357 = vmatpush.msra.mxu3 %v214_v26 }
  0x27   :  { %108 = vmatpush.msra.mxu0 %v79_v12  ;;  %345 = vmatpush.msra.mxu2 %v79_v12 }
  0x28   :  { %236 = vmatpush.msra.mxu1 %v213_v28  ;;  %358 = vmatpush.msra.mxu3 %v213_v28 }
  0x29   :  { %109 = vmatpush.msra.mxu0 %v78_v13  ;;  %346 = vmatpush.msra.mxu2 %v78_v13 }
  0x2a   :  { %237 = vmatpush.msra.mxu1 %v212_v29  ;;  %359 = vmatpush.msra.mxu3 %v212_v29 }
  0x2b   :  { %110 = vmatpush.msra.mxu0 %v77_v14  ;;  %347 = vmatpush.msra.mxu2 %v77_v14 }
  0x2c   :  { %238 = vmatpush.msra.mxu1 %v211_v32  ;;  %360 = vmatpush.msra.mxu3 %v211_v32 }
  0x2d   :  { %111 = vmatpush.msra.mxu0 %v76_v15  ;;  %348 = vmatpush.msra.mxu2 %v76_v15 }
  0x2e   :  { %112 = vmatmul.f32.vlgmr.msra.gmra.mxu0 %v74_v16  ;;  %115 = vmatmul.f32.vlgmr.msra.gmra.mxu2 %v75_v17 }
  0x2f   :  { %239 = vmatpush.msra.mxu1 %v210_v34  ;;  %361 = vmatpush.msra.mxu3 %v210_v34 }
  0x31   :  { %240 = vmatpush.msra.mxu1 %v209_v36  ;;  %362 = vmatpush.msra.mxu3 %v209_v36 }
  0x33   :  { %241 = vmatpush.msra.mxu1 %v208_v40  ;;  %363 = vmatpush.msra.mxu3 %v208_v40 }
  0x35   :  { %242 = vmatpush.msra.mxu1 %v207_v41  ;;  %364 = vmatpush.msra.mxu3 %v207_v41 }
  0xab   :  { %v113_v30 = vpop.f32.mrf.mxu0 }
  0xac   :  { %v552_v31 = vadd.f32 %v371_v27, %v113_v30 }
  0xae   :  { %v555_v33 = vmul.f32 0.70710677, %v552_v31 }
  0xb0   :  { %v123_v35 = vmul.f32 %v555_v33, %v555_v33 }
  0xb1   :  { %v116_v37 = vpop.f32.mrf.mxu2 }
  0xb2   :  { %v124_v38 = vmin.f32 %v123_v35, 16.0  ;;  %v559_v39 = vadd.f32 %v371_v27, %v116_v37 }
  0xb4   :  { %v562_v42 = vmul.f32 0.70710677, %v559_v39  ;;  %v125_v43 = vmul.f32 2.1237322e-06, %v124_v38  ;;  %v136_v44 = vmul.f32 3.8918573e-05, %v124_v38 }
  0xb6   :  { %v163_v45 = vmul.f32 %v562_v42, %v562_v42  ;;  %v126_v46 = vadd.f32 0.00028619796, %v125_v43  ;;  %v137_v47 = vadd.f32 0.001143296, %v136_v44 }
  0xb8   :  { %v164_v48 = vmin.f32 %v163_v45, 16.0  ;;  %v127_v49 = vmul.f32 %v126_v46, %v124_v38  ;;  %v138_v50 = vmul.f32 %v137_v47, %v124_v38  ;;  %v119_v45 = vmul.f32 0.5, %v552_v31 }
  0xba   :  { %v139_v51 = vadd.f32 0.014752088, %v138_v50  ;;  %v165_v52 = vmul.f32 2.1237322e-06, %v164_v48  ;;  %v128_v53 = vadd.f32 0.0036580483, %v127_v49 }
  0xbb   :  { %v176_v54 = vmul.f32 3.8918573e-05, %v164_v48 }
  0xbc   :  { %v140_v55 = vmul.f32 %v139_v51, %v124_v38  ;;  %v166_v56 = vadd.f32 0.00028619796, %v165_v52  ;;  %v129_v60 = vmul.f32 %v128_v53, %v124_v38  ;;  %v120_v53 = vmul.f32 0.5, %v559_v39 }
  0xbd   :  { %v177_v57 = vadd.f32 0.001143296, %v176_v54 }
  0xbe   :  { %v141_v58 = vadd.f32 0.112945676, %v140_v55  ;;  %v167_v59 = vmul.f32 %v166_v56, %v164_v48  ;;  %v130_v2 = vadd.f32 0.05243302, %v129_v60  ;;  %v372_v56 = vld [vmem:[%s591_s4] ss:$0 sm:$0xff] }
  0xbf   :  { %v178_v61 = vmul.f32 %v177_v57, %v164_v48 }
  0xc0   :  { %v142_v62 = vmul.f32 %v141_v58, %v124_v38  ;;  %v168_v1 = vadd.f32 0.0036580483, %v167_v59  ;;  %v131_v8 = vmul.f32 %v130_v2, %v124_v38 }
  0xc1   :  { %v179_v63 = vadd.f32 0.014752088, %v178_v61 }
  0xc2   :  { %v143_v0 = vadd.f32 0.4994258, %v142_v62  ;;  %v169_v7 = vmul.f32 %v168_v1, %v164_v48  ;;  %v132_v12 = vadd.f32 0.18741608, %v131_v8  ;;  %v258_v62 = vlaneseq }
  0xc3   :  { %v180_v3 = vmul.f32 %v179_v63, %v164_v48 }
  0xc4   :  { %v144_v4 = vmul.f32 %v143_v0, %v124_v38  ;;  %v170_v11 = vadd.f32 0.05243302, %v169_v7  ;;  %v133_v17 = vmul.f32 %v132_v12, %v124_v38  ;;  %v259_v63 = vand.u32 127, %v258_v62 }
  0xc5   :  { %v181_v5 = vadd.f32 0.112945676, %v180_v3 }
  0xc6   :  { %v145_v6 = vadd.f32 1.0, %v144_v4  ;;  %v171_v16 = vmul.f32 %v170_v11, %v164_v48  ;;  %v134_v22 = vadd.f32 1.1283791, %v133_v17  ;;  %vm260_vm8 = vcmp.lt.s32.totalorder %v259_v63, 32 }
  0xc7   :  { %v182_v9 = vmul.f32 %v181_v5, %v164_v48 }
  0xc8   :  { %375 = vrcp.f32 %v145_v6  ;;  %v157_v20 = vand.u32 2147483648, %v145_v6  ;;  %v172_v21 = vadd.f32 0.18741608, %v171_v16  ;;  %v155_v24 = vand.u32 2147483647, %v145_v6 }
  0xc9   :  { %v183_v10 = vadd.f32 0.4994258, %v182_v9  ;;  %vm151_vm1 = vweird.f32 %v145_v6  ;;  %v135_v30 = vmul.f32 %v134_v22, %v555_v33 }
  0xca   :  { %v158_v27 = vor.u32 1.1754944e-38, %v157_v20  ;;  %v173_v28 = vmul.f32 %v172_v21, %v164_v48  ;;  %vm156_vm3 = vcmp.eq.f32.partialorder %v155_v24, 8.507059e+37  ;;  %v373_v20 = vld [vmem:[%s592_s5] ss:$0 sm:$0xff]  ;;  %s490_s5 = smov [#allocation8]  }
  0xcb   :  { %v184_v13 = vmul.f32 %v183_v10, %v164_v48  ;;  %s315_s21 = sshll.u32 %s490_s5, 4  ;;  %s316_s21 = int_to_ptr.vmem [resolvable:$true] %s315_s21 }
  0xcc   :  { %v174_v38 = vadd.f32 1.1283791, %v173_v28 }
  0xcd   :  { %v185_v14 = vadd.f32 1.0, %v184_v13 }
  0xce   :  { %v376_v15 = vpop.eup %375  ;;  %v175_v33 = vmul.f32 %v174_v38, %v562_v42 }
  0xcf   :  { %v147_v18 = vmul.f32 %v376_v15, %v145_v6  ;;  %377 = vrcp.f32 %v185_v14  ;;  %vm152_vm0 = vweird.f32 %v376_v15  ;;  %v197_v37 = vand.u32 2147483648, %v185_v14 }
  0xd0   :  { %vm153_vm2 = vmor %vm151_vm1, %vm152_vm0  ;;  %v195_v41 = vand.u32 2147483647, %v185_v14  ;;  %vm191_vm5 = vweird.f32 %v185_v14 }
  0xd1   :  { %v148_v19 = vsub.f32 1.0, %v147_v18  ;;  %v198_v47 = vor.u32 1.1754944e-38, %v197_v37 }
  0xd2   :  { %vm196_vm7 = vcmp.eq.f32.partialorder %v195_v41, 8.507059e+37 }
  0xd3   :  { %v149_v23 = vmul.f32 %v376_v15, %v148_v19 }
  0xd5   :  { %v378_v25 = vpop.eup %377  ;;  %v150_v26 = vadd.f32 %v376_v15, %v149_v23  ;;  %v374_v23 = vld [vmem:[%s593_s6] ss:$0 sm:$0xff]  ;;  %s317_s6 = sshll.u32 %s594_s7, 4  ;;  %s318_s6 = int_to_ptr.hbm [resolvable:$true] %s317_s6 }
  0xd6   :  { %v187_v29 = vmul.f32 %v378_v25, %v185_v14  ;;  %vm192_vm4 = vweird.f32 %v378_v25 }
  0xd7   :  { %v154_v32 = vsel %vm153_vm2, %v376_v15, %v150_v26  ;;  %vm193_vm6 = vmor %vm191_vm5, %vm192_vm4 }
  0xd8   :  { %v159_v34 = vsel %vm156_vm3, %v158_v27, %v154_v32  ;;  %v188_v35 = vsub.f32 1.0, %v187_v29 }
  0xd9   :  { %v160_v36 = vmul.f32 %v159_v34, %v135_v30 }
  0xda   :  { %v189_v40 = vmul.f32 %v378_v25, %v188_v35 }
  0xdb   :  { %v331_v43 = vclamps-f32 %v160_v36, 1.0 }
  0xdc   :  { %v190_v44 = vadd.f32 %v378_v25, %v189_v40 }
  0xdd   :  { %v203_v46 = vadd.f32 1.0, %v331_v43 }
  0xde   :  { %v194_v48 = vsel %vm193_vm6, %v378_v25, %v190_v44 }
  0xdf   :  { %v205_v49 = vmul.f32 %v203_v46, %v119_v45  ;;  %v199_v50 = vsel %vm196_vm7, %v198_v47, %v194_v48 }
  0xe0   :  { %v200_v51 = vmul.f32 %v199_v50, %v175_v33 }
  0xe1   :  { %243 = vmatmul.f32.vlgmr.msra.gmra.mxu1 %v205_v49 }
  0xe2   :  { %v332_v52 = vclamps-f32 %v200_v51, 1.0 }
  0xe4   :  { %v204_v54 = vadd.f32 1.0, %v332_v52 }
  0xe6   :  { %v206_v55 = vmul.f32 %v204_v54, %v120_v53 }
  0xe8   :  { %246 = vmatmul.f32.vlgmr.msra.gmra.mxu3 %v206_v55 }
 0x15e   :  { %v244_v57 = vpop.f32.mrf.mxu1 }
 0x15f   :  { %v245_v58 = vadd.f32 %v372_v56, %v244_v57 }
 0x161   :  { %v250_v42 = vadd.f32 %v245_v58, %v552_v31 }
 0x163   :  { %252 = vadd.xlane.f32.xlu0 %v250_v42 }
 0x16b   :  { %v247_v59 = vpop.f32.mrf.mxu3 }
 0x16c   :  { %v248_v60 = vadd.f32 %v372_v56, %v247_v59 }
 0x16e   :  { %v251_v61 = vadd.f32 %v248_v60, %v559_v39 }
 0x170   :  { %254 = vadd.xlane.f32.xlu0 %v251_v61 }
 0x1d6   :  { %v253_v0 = vpop.xlane.xlu0 %252 }
 0x1d7   :  { %v256_v1 = vmul.f32 0.03125, %v253_v0 }
 0x1d9   :  { %v261_v2 = vsub.f32 %v250_v42, %v256_v1 }
 0x1db   :  { %v263_v3 = vsel %vm260_vm8, %v261_v2, 0.0 }
 0x1dc   :  { %v265_v4 = vmul.f32 %v263_v3, %v263_v3 }
 0x1de   :  { %267 = vadd.xlane.f32.xlu1 %v265_v4 }
 0x1e3   :  { %v255_v5 = vpop.xlane.xlu0 %254 }
 0x1e4   :  { %v257_v6 = vmul.f32 0.03125, %v255_v5 }
 0x1e6   :  { %v262_v7 = vsub.f32 %v251_v61, %v257_v6 }
 0x1e8   :  { %v264_v8 = vsel %vm260_vm8, %v262_v7, 0.0 }
 0x1e9   :  { %v266_v31 = vmul.f32 %v264_v8, %v264_v8 }
 0x1eb   :  { %269 = vadd.xlane.f32.xlu1 %v266_v31 }
 0x251   :  { %v268_v9 = vpop.xlane.xlu1 %267 }
 0x252   :  { %v271_v10 = vmul.f32 0.03125, %v268_v9 }
 0x254   :  { %v273_v11 = vadd.f32 1e-05, %v271_v10 }
 0x256   :  { %379 = vrsqrt.f32 %v273_v11  ;;  %vm281_vm10 = vweird.f32 %v273_v11 }
 0x25c   :  { %v380_v39 = vpop.eup %379 }
 0x25d   :  { %v276_v12 = vmul.f32 %v380_v39, %v273_v11  ;;  %vm282_vm9 = vweird.f32 %v380_v39 }
 0x25e   :  { %v270_v13 = vpop.xlane.xlu1 %269  ;;  %vm283_vm11 = vmor %vm281_vm10, %vm282_vm9 }
 0x25f   :  { %v277_v14 = vmul.f32 %v380_v39, %v276_v12  ;;  %v272_v15 = vmul.f32 0.03125, %v270_v13 }
 0x261   :  { %v278_v16 = vmul.f32 0.5, %v277_v14  ;;  %v274_v17 = vadd.f32 1e-05, %v272_v15 }
 0x263   :  { %v279_v18 = vsub.f32 1.5, %v278_v16  ;;  %381 = vrsqrt.f32 %v274_v17  ;;  %vm291_vm13 = vweird.f32 %v274_v17 }
 0x265   :  { %v280_v19 = vmul.f32 %v380_v39, %v279_v18 }
 0x267   :  { %v284_v21 = vsel %vm283_vm11, %v380_v39, %v280_v19 }
 0x268   :  { %v295_v22 = vmul.f32 %v284_v21, %v263_v3 }
 0x269   :  { %v382_v24 = vpop.eup %381 }
 0x26a   :  { %v286_v25 = vmul.f32 %v382_v24, %v274_v17  ;;  %v301_v26 = vmul.f32 %v373_v20, %v295_v22  ;;  %vm292_vm12 = vweird.f32 %v382_v24 }
 0x26b   :  { %vm293_vm14 = vmor %vm291_vm13, %vm292_vm12 }
 0x26c   :  { %v287_v27 = vmul.f32 %v382_v24, %v286_v25  ;;  %v307_v28 = vadd.f32 %v374_v23, %v301_v26 }
 0x26e   :  { %v288_v29 = vmul.f32 0.5, %v287_v27  ;;  %309 = vst [vmem:[#allocation8] sm:$0xff] %v307_v28 }
 0x270   :  { %v289_v30 = vsub.f32 1.5, %v288_v29 }
 0x272   :  { %v290_v32 = vmul.f32 %v382_v24, %v289_v30 }
 0x274   :  { %v294_v34 = vsel %vm293_vm14, %v382_v24, %v290_v32 }
 0x275   :  { %v296_v35 = vmul.f32 %v294_v34, %v264_v8 }
 0x277   :  { %v302_v36 = vmul.f32 %v373_v20, %v296_v35 }
 0x279   :  { %v308_v37 = vadd.f32 %v374_v23, %v302_v36 }
 0x27b   :  { %310 = vst [vmem:[#allocation8 + $0x8] sm:$0xff] %v308_v37 }
 0x27c   :  { %323 = dma.vmem_to_hbm [thread:$0]  %s316_s21, 256, %s318_s6, [#allocation4], %s486_s9, %s486_s9, %s487_s10  }
 0x27d   :  { %483 = dma.done.wait [#allocation4], 256  }
 0x27e   :  { %484 = vsyncadd [#allocation4], 4294967040 }
 0x27f   :  { %328 = vsyncpa [#allocation3], 1 }
 0x280   :  { %329 = vsyncpa [#allocation6], 1 }
 0x281   :  { %330 = vsyncpa [#allocation4], 1 }

// kernel: tpu_custom_call.1
= control target key start
LH: loop header
LB: loop body
LE: loop exit
PB: predicated region body
PF: predicated region fallthrough
CT: control target
= control target key end

     0   :  { %12 = vsyncpa [#allocation3], 0  ;;  %s587_s0 = inlined_call_operand.hbm [shape: f32[16,128], index: 0, kind: input, shape index: {}]   ;;  %s588_s1 = inlined_call_operand.hbm [shape: f32[128,128], index: 1, kind: input, shape index: {}]   ;;  %s589_s2 = inlined_call_operand.vmem [shape: f32[1,128], index: 2, kind: input, shape index: {}]   ;;  %s590_s3 = inlined_call_operand.hbm [shape: f32[128,128], index: 3, kind: input, shape index: {}]   ;;  %s591_s4 = inlined_call_operand.vmem [shape: f32[1,128], index: 4, kind: input, shape index: {}]   ;;  %s592_s5 = inlined_call_operand.vmem [shape: f32[1,128], index: 5, kind: input, shape index: {}]   ;;  %s593_s6 = inlined_call_operand.vmem [shape: f32[1,128], index: 6, kind: input, shape index: {}]   ;;  %s594_s7 = inlined_call_operand.hbm [shape: f32[16,128], index: 7, kind: output, shape index: {}]  }
   0x1   :  { %13 = vsyncpa [#allocation6], 0 }
   0x2   :  { %14 = vsyncpa [#allocation4], 0  ;;  %s32_s26 = sshll.u32 %s588_s1, 4  ;;  %s485_s27 = smov [#allocation5]   ;;  %s33_s26 = int_to_ptr.hbm [resolvable:$true] %s32_s26 }
   0x3   :  { %s34_s28 = sshll.u32 %s485_s27, 4  ;;  %s19_s8 = sshll.u32 %s587_s0, 4  ;;  %s35_s28 = int_to_ptr.vmem [resolvable:$true] %s34_s28  ;;  %s20_s8 = int_to_ptr.hbm [resolvable:$true] %s19_s8 }
   0x4   :  { %s486_s9 = smov 128   ;;  %s487_s10 = smov 8  }
   0x5   :  { %40 = dma.hbm_to_vmem [thread:$0]  %s33_s26, 2048, %s35_s28, [#allocation6], %s486_s9, %s486_s9, %s487_s10  }
   0x6   :  { %s488_s11 = smov [#allocation2]   ;;  %s47_s1 = sshll.u32 %s590_s3, 4  ;;  %s48_s1 = int_to_ptr.hbm [resolvable:$true] %s47_s1 }
   0x7   :  { %s21_s12 = sshll.u32 %s488_s11, 4  ;;  %s489_s0 = smov [#allocation7]   ;;  %s22_s12 = int_to_ptr.vmem [resolvable:$true] %s21_s12 }
   0x8   :  { %27 = dma.hbm_to_vmem [thread:$0]  %s20_s8, 256, %s22_s12, [#allocation3], %s486_s9, %s486_s9, %s487_s10  }
   0x9   :  { %s49_s15 = sshll.u32 %s489_s0, 4  ;;  %s50_s15 = int_to_ptr.vmem [resolvable:$true] %s49_s15 }
   0xa   :  { %55 = dma.hbm_to_vmem [thread:$0]  %s48_s1, 2048, %s50_s15, [#allocation6], %s486_s9, %s486_s9, %s487_s10  }
   0xb   :  { %479 = dma.done.wait [#allocation3], 256  }
   0xc   :  { %480 = vsyncadd [#allocation3], 4294967040 }
   0xd   :  { %481 = dma.done.wait [#allocation6], 4096  }
   0xe   :  { %482 = vsyncadd [#allocation6], 4294963200  ;;  %v91_v0 = vld [vmem:[#allocation5 + $0x78] sm:$0xff]  ;;  %v90_v1 = vld [vmem:[#allocation5 + $0x70] sm:$0xff] }
   0xf   :  { %96 = vmatpush.msra.mxu0 %v91_v0  ;;  %333 = vmatpush.msra.mxu2 %v91_v0  ;;  %v89_v2 = vld [vmem:[#allocation5 + $0x68] sm:$0xff]  ;;  %v88_v3 = vld [vmem:[#allocation5 + $0x60] sm:$0xff]  ;;  %v87_v4 = vld [vmem:[#allocation5 + $0x58] sm:$0xff] }
  0x10   :  { %v86_v5 = vld [vmem:[#allocation5 + $0x50] sm:$0xff]  ;;  %v85_v6 = vld [vmem:[#allocation5 + $0x48] sm:$0xff]  ;;  %v84_v7 = vld [vmem:[#allocation5 + $0x40] sm:$0xff] }
  0x11   :  { %97 = vmatpush.msra.mxu0 %v90_v1  ;;  %334 = vmatpush.msra.mxu2 %v90_v1  ;;  %v83_v8 = vld [vmem:[#allocation5 + $0x38] sm:$0xff]  ;;  %v82_v9 = vld [vmem:[#allocation5 + $0x30] sm:$0xff]  ;;  %v81_v10 = vld [vmem:[#allocation5 + $0x28] sm:$0xff] }
  0x12   :  { %v80_v11 = vld [vmem:[#allocation5 + $0x20] sm:$0xff]  ;;  %v79_v12 = vld [vmem:[#allocation5 + $0x18] sm:$0xff]  ;;  %v78_v13 = vld [vmem:[#allocation5 + $0x10] sm:$0xff] }
  0x13   :  { %98 = vmatpush.msra.mxu0 %v89_v2  ;;  %335 = vmatpush.msra.mxu2 %v89_v2  ;;  %v77_v14 = vld [vmem:[#allocation5 + $0x8] sm:$0xff]  ;;  %v76_v15 = vld [vmem:[#allocation5] sm:$0xff]  ;;  %v74_v16 = vld [vmem:[#allocation2] sm:$0xff] }
  0x14   :  { %v75_v17 = vld [vmem:[#allocation2 + $0x8] sm:$0xff]  ;;  %v221_v19 = vld [vmem:[#allocation7 + $0x70] sm:$0xff]  ;;  %v220_v20 = vld [vmem:[#allocation7 + $0x68] sm:$0xff] }
  0x15   :  { %99 = vmatpush.msra.mxu0 %v88_v3  ;;  %336 = vmatpush.msra.mxu2 %v88_v3  ;;  %v222_v18 = vld [vmem:[#allocation7 + $0x78] sm:$0xff]  ;;  %v219_v21 = vld [vmem:[#allocation7 + $0x60] sm:$0xff]  ;;  %v217_v23 = vld [vmem:[#allocation7 + $0x50] sm:$0xff] }
  0x16   :  { %227 = vmatpush.msra.mxu1 %v222_v18  ;;  %349 = vmatpush.msra.mxu3 %v222_v18  ;;  %v218_v22 = vld [vmem:[#allocation7 + $0x58] sm:$0xff]  ;;  %v216_v24 = vld [vmem:[#allocation7 + $0x48] sm:$0xff]  ;;  %v215_v25 = vld [vmem:[#allocation7 + $0x40] sm:$0xff] }
  0x17   :  { %100 = vmatpush.msra.mxu0 %v87_v4  ;;  %337 = vmatpush.msra.mxu2 %v87_v4  ;;  %v214_v26 = vld [vmem:[#allocation7 + $0x38] sm:$0xff]  ;;  %v371_v27 = vld [vmem:[%s589_s2] ss:$0 sm:$0xff]  ;;  %v212_v29 = vld [vmem:[#allocation7 + $0x28] sm:$0xff] }
  0x18   :  { %228 = vmatpush.msra.mxu1 %v221_v19  ;;  %350 = vmatpush.msra.mxu3 %v221_v19  ;;  %v213_v28 = vld [vmem:[#allocation7 + $0x30] sm:$0xff]  ;;  %v211_v32 = vld [vmem:[#allocation7 + $0x20] sm:$0xff]  ;;  %v210_v34 = vld [vmem:[#allocation7 + $0x18] sm:$0xff] }
  0x19   :  { %101 = vmatpush.msra.mxu0 %v86_v5  ;;  %338 = vmatpush.msra.mxu2 %v86_v5  ;;  %v209_v36 = vld [vmem:[#allocation7 + $0x10] sm:$0xff]  ;;  %v208_v40 = vld [vmem:[#allocation7 + $0x8] sm:$0xff]  ;;  %v207_v41 = vld [vmem:[#allocation7] sm:$0xff] }
  0x1a   :  { %229 = vmatpush.msra.mxu1 %v220_v20  ;;  %351 = vmatpush.msra.mxu3 %v220_v20 }
  0x1b   :  { %102 = vmatpush.msra.mxu0 %v85_v6  ;;  %339 = vmatpush.msra.mxu2 %v85_v6 }
  0x1c   :  { %230 = vmatpush.msra.mxu1 %v219_v21  ;;  %352 = vmatpush.msra.mxu3 %v219_v21 }
  0x1d   :  { %103 = vmatpush.msra.mxu0 %v84_v7  ;;  %340 = vmatpush.msra.mxu2 %v84_v7 }
  0x1e   :  { %231 = vmatpush.msra.mxu1 %v218_v22  ;;  %353 = vmatpush.msra.mxu3 %v218_v22 }
  0x1f   :  { %104 = vmatpush.msra.mxu0 %v83_v8  ;;  %341 = vmatpush.msra.mxu2 %v83_v8 }
  0x20   :  { %232 = vmatpush.msra.mxu1 %v217_v23  ;;  %354 = vmatpush.msra.mxu3 %v217_v23 }
  0x21   :  { %105 = vmatpush.msra.mxu0 %v82_v9  ;;  %342 = vmatpush.msra.mxu2 %v82_v9 }
  0x22   :  { %233 = vmatpush.msra.mxu1 %v216_v24  ;;  %355 = vmatpush.msra.mxu3 %v216_v24 }
  0x23   :  { %106 = vmatpush.msra.mxu0 %v81_v10  ;;  %343 = vmatpush.msra.mxu2 %v81_v10 }
  0x24   :  { %234 = vmatpush.msra.mxu1 %v215_v25  ;;  %356 = vmatpush.msra.mxu3 %v215_v25 }
  0x25   :  { %107 = vmatpush.msra.mxu0 %v80_v11  ;;  %344 = vmatpush.msra.mxu2 %v80_v11 }
  0x26   :  { %235 = vmatpush.msra.mxu1 %v214_v26  ;;  %357 = vmatpush.msra.mxu3 %v214_v26 }
  0x27   :  { %108 = vmatpush.msra.mxu0 %v79_v12  ;;  %345 = vmatpush.msra.mxu2 %v79_v12 }
  0x28   :  { %236 = vmatpush.msra.mxu1 %v213_v28  ;;  %358 = vmatpush.msra.mxu3 %v213_v28 }
  0x29   :  { %109 = vmatpush.msra.mxu0 %v78_v13  ;;  %346 = vmatpush.msra.mxu2 %v78_v13 }
  0x2a   :  { %237 = vmatpush.msra.mxu1 %v212_v29  ;;  %359 = vmatpush.msra.mxu3 %v212_v29 }
  0x2b   :  { %110 = vmatpush.msra.mxu0 %v77_v14  ;;  %347 = vmatpush.msra.mxu2 %v77_v14 }
  0x2c   :  { %238 = vmatpush.msra.mxu1 %v211_v32  ;;  %360 = vmatpush.msra.mxu3 %v211_v32 }
  0x2d   :  { %111 = vmatpush.msra.mxu0 %v76_v15  ;;  %348 = vmatpush.msra.mxu2 %v76_v15 }
  0x2e   :  { %112 = vmatmul.f32.vlgmr.msra.gmra.mxu0 %v74_v16  ;;  %115 = vmatmul.f32.vlgmr.msra.gmra.mxu2 %v75_v17 }
  0x2f   :  { %239 = vmatpush.msra.mxu1 %v210_v34  ;;  %361 = vmatpush.msra.mxu3 %v210_v34 }
  0x31   :  { %240 = vmatpush.msra.mxu1 %v209_v36  ;;  %362 = vmatpush.msra.mxu3 %v209_v36 }
  0x33   :  { %241 = vmatpush.msra.mxu1 %v208_v40  ;;  %363 = vmatpush.msra.mxu3 %v208_v40 }
  0x35   :  { %242 = vmatpush.msra.mxu1 %v207_v41  ;;  %364 = vmatpush.msra.mxu3 %v207_v41 }
  0xab   :  { %v113_v30 = vpop.f32.mrf.mxu0 }
  0xac   :  { %v552_v31 = vadd.f32 %v371_v27, %v113_v30 }
  0xae   :  { %v555_v33 = vmul.f32 0.70710677, %v552_v31 }
  0xb0   :  { %v123_v35 = vmul.f32 %v555_v33, %v555_v33 }
  0xb1   :  { %v116_v37 = vpop.f32.mrf.mxu2 }
  0xb2   :  { %v124_v38 = vmin.f32 %v123_v35, 16.0  ;;  %v559_v39 = vadd.f32 %v371_v27, %v116_v37 }
  0xb4   :  { %v562_v42 = vmul.f32 0.70710677, %v559_v39  ;;  %v125_v43 = vmul.f32 2.1237322e-06, %v124_v38  ;;  %v136_v44 = vmul.f32 3.8918573e-05, %v124_v38 }
  0xb6   :  { %v163_v45 = vmul.f32 %v562_v42, %v562_v42  ;;  %v126_v46 = vadd.f32 0.00028619796, %v125_v43  ;;  %v137_v47 = vadd.f32 0.001143296, %v136_v44 }
  0xb8   :  { %v164_v48 = vmin.f32 %v163_v45, 16.0  ;;  %v127_v49 = vmul.f32 %v126_v46, %v124_v38  ;;  %v138_v50 = vmul.f32 %v137_v47, %v124_v38  ;;  %v119_v45 = vmul.f32 0.5, %v552_v31 }
  0xba   :  { %v139_v51 = vadd.f32 0.014752088, %v138_v50  ;;  %v165_v52 = vmul.f32 2.1237322e-06, %v164_v48  ;;  %v128_v53 = vadd.f32 0.0036580483, %v127_v49 }
  0xbb   :  { %v176_v54 = vmul.f32 3.8918573e-05, %v164_v48 }
  0xbc   :  { %v140_v55 = vmul.f32 %v139_v51, %v124_v38  ;;  %v166_v56 = vadd.f32 0.00028619796, %v165_v52  ;;  %v129_v60 = vmul.f32 %v128_v53, %v124_v38  ;;  %v120_v53 = vmul.f32 0.5, %v559_v39 }
  0xbd   :  { %v177_v57 = vadd.f32 0.001143296, %v176_v54 }
  0xbe   :  { %v141_v58 = vadd.f32 0.112945676, %v140_v55  ;;  %v167_v59 = vmul.f32 %v166_v56, %v164_v48  ;;  %v130_v2 = vadd.f32 0.05243302, %v129_v60  ;;  %v372_v56 = vld [vmem:[%s591_s4] ss:$0 sm:$0xff] }
  0xbf   :  { %v178_v61 = vmul.f32 %v177_v57, %v164_v48 }
  0xc0   :  { %v142_v62 = vmul.f32 %v141_v58, %v124_v38  ;;  %v168_v1 = vadd.f32 0.0036580483, %v167_v59  ;;  %v131_v8 = vmul.f32 %v130_v2, %v124_v38 }
  0xc1   :  { %v179_v63 = vadd.f32 0.014752088, %v178_v61 }
  0xc2   :  { %v143_v0 = vadd.f32 0.4994258, %v142_v62  ;;  %v169_v7 = vmul.f32 %v168_v1, %v164_v48  ;;  %v132_v12 = vadd.f32 0.18741608, %v131_v8  ;;  %v258_v62 = vlaneseq }
  0xc3   :  { %v180_v3 = vmul.f32 %v179_v63, %v164_v48 }
  0xc4   :  { %v144_v4 = vmul.f32 %v143_v0, %v124_v38  ;;  %v170_v11 = vadd.f32 0.05243302, %v169_v7  ;;  %v133_v17 = vmul.f32 %v132_v12, %v124_v38  ;;  %v259_v63 = vand.u32 127, %v258_v62 }
  0xc5   :  { %v181_v5 = vadd.f32 0.112945676, %v180_v3 }
  0xc6   :  { %v145_v6 = vadd.f32 1.0, %v144_v4  ;;  %v171_v16 = vmul.f32 %v170_v11, %v164_v48  ;;  %v134_v22 = vadd.f32 1.1283791, %v133_v17  ;;  %vm260_vm8 = vcmp.lt.s32.totalorder %v259_v63, 32 }
  0xc7   :  { %v182_v9 = vmul.f32 %v181_v5, %v164_v48 }
  0xc8   :  { %375 = vrcp.f32 %v145_v6  ;;  %v157_v20 = vand.u32 2147483648, %v145_v6  ;;  %v172_v21 = vadd.f32 0.18741608, %v171_v16  ;;  %v155_v24 = vand.u32 2147483647, %v145_v6 }
  0xc9   :  { %v183_v10 = vadd.f32 0.4994258, %v182_v9  ;;  %vm151_vm1 = vweird.f32 %v145_v6  ;;  %v135_v30 = vmul.f32 %v134_v22, %v555_v33 }
  0xca   :  { %v158_v27 = vor.u32 1.1754944e-38, %v157_v20  ;;  %v173_v28 = vmul.f32 %v172_v21, %v164_v48  ;;  %vm156_vm3 = vcmp.eq.f32.partialorder %v155_v24, 8.507059e+37  ;;  %v373_v20 = vld [vmem:[%s592_s5] ss:$0 sm:$0xff]  ;;  %s490_s5 = smov [#allocation8]  }
  0xcb   :  { %v184_v13 = vmul.f32 %v183_v10, %v164_v48  ;;  %s315_s21 = sshll.u32 %s490_s5, 4  ;;  %s316_s21 = int_to_ptr.vmem [resolvable:$true] %s315_s21 }
  0xcc   :  { %v174_v38 = vadd.f32 1.1283791, %v173_v28 }
  0xcd   :  { %v185_v14 = vadd.f32 1.0, %v184_v13 }
  0xce   :  { %v376_v15 = vpop.eup %375  ;;  %v175_v33 = vmul.f32 %v174_v38, %v562_v42 }
  0xcf   :  { %v147_v18 = vmul.f32 %v376_v15, %v145_v6  ;;  %377 = vrcp.f32 %v185_v14  ;;  %vm152_vm0 = vweird.f32 %v376_v15  ;;  %v197_v37 = vand.u32 2147483648, %v185_v14 }
  0xd0   :  { %vm153_vm2 = vmor %vm151_vm1, %vm152_vm0  ;;  %v195_v41 = vand.u32 2147483647, %v185_v14  ;;  %vm191_vm5 = vweird.f32 %v185_v14 }
  0xd1   :  { %v148_v19 = vsub.f32 1.0, %v147_v18  ;;  %v198_v47 = vor.u32 1.1754944e-38, %v197_v37 }
  0xd2   :  { %vm196_vm7 = vcmp.eq.f32.partialorder %v195_v41, 8.507059e+37 }
  0xd3   :  { %v149_v23 = vmul.f32 %v376_v15, %v148_v19 }
  0xd5   :  { %v378_v25 = vpop.eup %377  ;;  %v150_v26 = vadd.f32 %v376_v15, %v149_v23  ;;  %v374_v23 = vld [vmem:[%s593_s6] ss:$0 sm:$0xff]  ;;  %s317_s6 = sshll.u32 %s594_s7, 4  ;;  %s318_s6 = int_to_ptr.hbm [resolvable:$true] %s317_s6 }
  0xd6   :  { %v187_v29 = vmul.f32 %v378_v25, %v185_v14  ;;  %vm192_vm4 = vweird.f32 %v378_v25 }
  0xd7   :  { %v154_v32 = vsel %vm153_vm2, %v376_v15, %v150_v26  ;;  %vm193_vm6 = vmor %vm191_vm5, %vm192_vm4 }
  0xd8   :  { %v159_v34 = vsel %vm156_vm3, %v158_v27, %v154_v32  ;;  %v188_v35 = vsub.f32 1.0, %v187_v29 }
  0xd9   :  { %v160_v36 = vmul.f32 %v159_v34, %v135_v30 }
  0xda   :  { %v189_v40 = vmul.f32 %v378_v25, %v188_v35 }
  0xdb   :  { %v331_v43 = vclamps-f32 %v160_v36, 1.0 }
  0xdc   :  { %v190_v44 = vadd.f32 %v378_v25, %v189_v40 }
  0xdd   :  { %v203_v46 = vadd.f32 1.0, %v331_v43 }
  0xde   :  { %v194_v48 = vsel %vm193_vm6, %v378_v25, %v190_v44 }
  0xdf   :  { %v205_v49 = vmul.f32 %v203_v46, %v119_v45  ;;  %v199_v50 = vsel %vm196_vm7, %v198_v47, %v194_v48 }
  0xe0   :  { %v200_v51 = vmul.f32 %v199_v50, %v175_v33 }
  0xe1   :  { %243 = vmatmul.f32.vlgmr.msra.gmra.mxu1 %v205_v49 }
  0xe2   :  { %v332_v52 = vclamps-f32 %v200_v51, 1.0 }
  0xe4   :  { %v204_v54 = vadd.f32 1.0, %v332_v52 }
  0xe6   :  { %v206_v55 = vmul.f32 %v204_v54, %v120_v53 }
  0xe8   :  { %246 = vmatmul.f32.vlgmr.msra.gmra.mxu3 %v206_v55 }
 0x15e   :  { %v244_v57 = vpop.f32.mrf.mxu1 }
 0x15f   :  { %v245_v58 = vadd.f32 %v372_v56, %v244_v57 }
 0x161   :  { %v250_v42 = vadd.f32 %v245_v58, %v552_v31 }
 0x163   :  { %252 = vadd.xlane.f32.xlu0 %v250_v42 }
 0x16b   :  { %v247_v59 = vpop.f32.mrf.mxu3 }
 0x16c   :  { %v248_v60 = vadd.f32 %v372_v56, %v247_v59 }
 0x16e   :  { %v251_v61 = vadd.f32 %v248_v60, %v559_v39 }
 0x170   :  { %254 = vadd.xlane.f32.xlu0 %v251_v61 }
 0x1d6   :  { %v253_v0 = vpop.xlane.xlu0 %252 }
 0x1d7   :  { %v256_v1 = vmul.f32 0.03125, %v253_v0 }
 0x1d9   :  { %v261_v2 = vsub.f32 %v250_v42, %v256_v1 }
 0x1db   :  { %v263_v3 = vsel %vm260_vm8, %v261_v2, 0.0 }
 0x1dc   :  { %v265_v4 = vmul.f32 %v263_v3, %v263_v3 }
 0x1de   :  { %267 = vadd.xlane.f32.xlu1 %v265_v4 }
 0x1e3   :  { %v255_v5 = vpop.xlane.xlu0 %254 }
 0x1e4   :  { %v257_v6 = vmul.f32 0.03125, %v255_v5 }
 0x1e6   :  { %v262_v7 = vsub.f32 %v251_v61, %v257_v6 }
 0x1e8   :  { %v264_v8 = vsel %vm260_vm8, %v262_v7, 0.0 }
 0x1e9   :  { %v266_v31 = vmul.f32 %v264_v8, %v264_v8 }
 0x1eb   :  { %269 = vadd.xlane.f32.xlu1 %v266_v31 }
 0x251   :  { %v268_v9 = vpop.xlane.xlu1 %267 }
 0x252   :  { %v271_v10 = vmul.f32 0.03125, %v268_v9 }
 0x254   :  { %v273_v11 = vadd.f32 1e-05, %v271_v10 }
 0x256   :  { %379 = vrsqrt.f32 %v273_v11  ;;  %vm281_vm10 = vweird.f32 %v273_v11 }
 0x25c   :  { %v380_v39 = vpop.eup %379 }
 0x25d   :  { %v276_v12 = vmul.f32 %v380_v39, %v273_v11  ;;  %vm282_vm9 = vweird.f32 %v380_v39 }
 0x25e   :  { %v270_v13 = vpop.xlane.xlu1 %269  ;;  %vm283_vm11 = vmor %vm281_vm10, %vm282_vm9 }
 0x25f   :  { %v277_v14 = vmul.f32 %v380_v39, %v276_v12  ;;  %v272_v15 = vmul.f32 0.03125, %v270_v13 }
 0x261   :  { %v278_v16 = vmul.f32 0.5, %v277_v14  ;;  %v274_v17 = vadd.f32 1e-05, %v272_v15 }
 0x263   :  { %v279_v18 = vsub.f32 1.5, %v278_v16  ;;  %381 = vrsqrt.f32 %v274_v17  ;;  %vm291_vm13 = vweird.f32 %v274_v17 }
 0x265   :  { %v280_v19 = vmul.f32 %v380_v39, %v279_v18 }
 0x267   :  { %v284_v21 = vsel %vm283_vm11, %v380_v39, %v280_v19 }
 0x268   :  { %v295_v22 = vmul.f32 %v284_v21, %v263_v3 }
 0x269   :  { %v382_v24 = vpop.eup %381 }
 0x26a   :  { %v286_v25 = vmul.f32 %v382_v24, %v274_v17  ;;  %v301_v26 = vmul.f32 %v373_v20, %v295_v22  ;;  %vm292_vm12 = vweird.f32 %v382_v24 }
 0x26b   :  { %vm293_vm14 = vmor %vm291_vm13, %vm292_vm12 }
 0x26c   :  { %v287_v27 = vmul.f32 %v382_v24, %v286_v25  ;;  %v307_v28 = vadd.f32 %v374_v23, %v301_v26 }
 0x26e   :  { %v288_v29 = vmul.f32 0.5, %v287_v27  ;;  %309 = vst [vmem:[#allocation8] sm:$0xff] %v307_v28 }
 0x270   :  { %v289_v30 = vsub.f32 1.5, %v288_v29 }
 0x272   :  { %v290_v32 = vmul.f32 %v382_v24, %v289_v30 }
 0x274   :  { %v294_v34 = vsel %vm293_vm14, %v382_v24, %v290_v32 }
 0x275   :  { %v296_v35 = vmul.f32 %v294_v34, %v264_v8 }
 0x277   :  { %v302_v36 = vmul.f32 %v373_v20, %v296_v35 }
 0x279   :  { %v308_v37 = vadd.f32 %v374_v23, %v302_v36 }
 0x27b   :  { %310 = vst [vmem:[#allocation8 + $0x8] sm:$0xff] %v308_v37 }
 0x27c   :  { %323 = dma.vmem_to_hbm [thread:$0]  %s316_s21, 256, %s318_s6, [#allocation4], %s486_s9, %s486_s9, %s487_s10  }
 0x27d   :  { %483 = dma.done.wait [#allocation4], 256  }
 0x27e   :  { %484 = vsyncadd [#allocation4], 4294967040 }
 0x27f   :  { %328 = vsyncpa [#allocation3], 1 }
 0x280   :  { %329 = vsyncpa [#allocation6], 1 }
 0x281   :  { %330 = vsyncpa [#allocation4], 1 }

</bundles_post_ra>
